<compile_context>
chip_gen: v5e
topology: v5e:2x2
jax: 0.10.0
libtpu: 0.0.40
codegen_flags: <defaults>
</compile_context>

<pallas_src>
import math

import jax
import jax.numpy as jnp
from jax import lax
from jax.experimental import pallas as pl
from jax.experimental.pallas import tpu as pltpu

EMBED = 512            # embedding_dim fixed in ReasoningXMLCLIP.__init__
IN_DIM = 3 * EMBED
LANE = 128


def _round_up(x, m):
    return (x + m - 1) // m * m


def _layernorm(x, w, b, eps):
    x = x.astype(jnp.float32)
    mu = jnp.mean(x, axis=-1, keepdims=True)
    xc = x - mu
    var = jnp.mean(xc * xc, axis=-1, keepdims=True)
    return xc * lax.rsqrt(var + eps) * w + b


def reasoning_kernel(text_ref, left_ref, right_ref,
                     lnw_ref, lnb_ref,
                     w1_ref, b1_ref, ln2w_ref, ln2b_ref,
                     w2_ref, b2_ref,
                     out_ref, feat_ref):
    lnw = lnw_ref[...]
    lnb = lnb_ref[...]
    cdt = feat_ref.dtype

    # Outer nn.LayerNorm(512), eps=1e-5.  The three normalized blocks are
    # written at static (128-aligned) offsets into one [TM, 1536] scratch so
    # the classifier's first Linear is a single K=1536 matmul that accumulates
    # inside the MXU (no extra result pops / VPU adds).
    feat_ref[:, 0:EMBED] = _layernorm(text_ref[...], lnw, lnb, 1e-5).astype(cdt)
    feat_ref[:, EMBED:2 * EMBED] = _layernorm(left_ref[...], lnw, lnb, 1e-5).astype(cdt)
    feat_ref[:, 2 * EMBED:3 * EMBED] = _layernorm(right_ref[...], lnw, lnb, 1e-5).astype(cdt)

    # Linear(3*512, hid): bf16 operands, f32 accumulation.
    h = jnp.dot(feat_ref[...], w1_ref[...],
                preferred_element_type=jnp.float32) + b1_ref[...]

    # GeLU (erf formulation, exactly as in the module).
    h = h * 0.5 * (1.0 + lax.erf(h / math.sqrt(2.0)))

    # BertLayerNorm(hid_dim, eps=1e-12).
    h = _layernorm(h, ln2w_ref[...], ln2b_ref[...], 1e-12)

    # Final Linear(hid, out_dim); columns zero-padded to 128 -> lane-dense store.
    out_ref[...] = (jnp.dot(h.astype(w2_ref.dtype), w2_ref[...],
                            preferred_element_type=jnp.float32)
                    + b2_ref[...])


def reasoning_xmlclip_forward(image_features, text_features, params,
                              *, compute_dtype=jnp.bfloat16, tm=512):
    """image_features: [2B, 512]; text_features: [B, 512]  ->  [B, out_dim]."""
    B = text_features.shape[0]
    assert image_features.shape == (2 * B, EMBED)
    hid = params["w1"].shape[1]
    out_dim = params["w2"].shape[1]
    out_pad = _round_up(out_dim, LANE)

    # Split image halves in the wrapper (free; keeps every kernel slice
    # (8,128)-tile aligned even when B is not a multiple of 8).
    left = image_features[:B]
    right = image_features[B:]

    # Batch tile: multiple of 8 (sublane), capped at 512 rows (multiple of the
    # 256-row MXU M dim on v6e/v7x) — ~8-9 MiB VMEM incl. double buffers, safe
    # under the default scoped limit on v5e/v6e/v7x.
    tm = min(tm, _round_up(B, 8))
    bp = _round_up(B, tm)
    pad = bp - B
    if pad:
        text_features = jnp.pad(text_features, ((0, pad), (0, 0)))
        left = jnp.pad(left, ((0, pad), (0, 0)))
        right = jnp.pad(right, ((0, pad), (0, 0)))

    # Weights streamed/kept in bf16 (half the DMA bytes & MXU passes); biases
    # and LN params stay f32 (added on the f32 accumulator path).  Final layer
    # zero-padded to 128 output columns for lane-dense stores.
    w1 = params["w1"].astype(compute_dtype)
    b1 = params["b1"].astype(jnp.float32)
    w2 = jnp.pad(params["w2"], ((0, 0), (0, out_pad - out_dim))).astype(compute_dtype)
    b2 = jnp.pad(params["b2"], ((0, 0), (0, out_pad - out_dim))).astype(jnp.float32)

    args = (text_features, left, right,
            params["ln_w"], params["ln_b"],
            w1, b1, params["ln2_w"], params["ln2_b"],
            w2, b2)

    def batch_spec(cols):
        return pl.BlockSpec((tm, cols), lambda i: (i, 0))

    def resident_spec(shape):
        # Constant index_map -> block stays VMEM-resident, one DMA total.
        return pl.BlockSpec(shape, lambda i: (0, 0))

    in_specs = ([batch_spec(EMBED)] * 3
                + [resident_spec(a.shape) for a in args[3:]])

    flops = 2 * bp * (IN_DIM * hid + hid * out_pad)
    bytes_accessed = (sum(int(a.size) * a.dtype.itemsize for a in args)
                      + bp * out_pad * 4)

    out = pl.pallas_call(
        reasoning_kernel,
        out_shape=jax.ShapeDtypeStruct((bp, out_pad), jnp.float32),
        grid=(bp // tm,),
        in_specs=in_specs,
        out_specs=batch_spec(out_pad),
        scratch_shapes=[pltpu.VMEM((tm, IN_DIM), compute_dtype)],
        compiler_params=pltpu.CompilerParams(
            dimension_semantics=("parallel",)),
        cost_estimate=pl.CostEstimate(
            flops=flops, transcendentals=bp * hid, bytes_accessed=bytes_accessed),
    )(*args)

    return out[:B, :out_dim]


def init_params(key, in_dim, hid_dim, out_dim):
    """Deterministic parameter init mirroring the module's init_weights."""
    k1, k2 = jax.random.split(key, 2)

    def xavier(k, fan_in, fan_out):
        bound = math.sqrt(6.0 / (fan_in + fan_out))
        # stored as [in, out] (transposed vs. torch's [out, in])
        return jax.random.uniform(k, (fan_in, fan_out), jnp.float32, -bound, bound)

    return {
        # outer nn.LayerNorm(512): default init (weight=1, bias=0)
        "ln_w": jnp.ones((1, EMBED), jnp.float32),
        "ln_b": jnp.zeros((1, EMBED), jnp.float32),
        # classifier Linear(in_dim, hid_dim): xavier_uniform, zero bias
        "w1": xavier(k1, in_dim, hid_dim),
        "b1": jnp.zeros((1, hid_dim), jnp.float32),
        # BertLayerNorm(hid_dim): weight=1, bias=0
        "ln2_w": jnp.ones((1, hid_dim), jnp.float32),
        "ln2_b": jnp.zeros((1, hid_dim), jnp.float32),
        # classifier Linear(hid_dim, out_dim): xavier_uniform, zero bias
        "w2": xavier(k2, hid_dim, out_dim),
        "b2": jnp.zeros((1, out_dim), jnp.float32),
    }


def reference_forward(image_features, text_features, params):
    """Pure-JAX f32 reference of the module math."""
    B = text_features.shape[0]
    text = _layernorm(text_features, params["ln_w"], params["ln_b"], 1e-5)
    left = _layernorm(image_features[:B], params["ln_w"], params["ln_b"], 1e-5)
    right = _layernorm(image_features[B:], params["ln_w"], params["ln_b"], 1e-5)
    feats = jnp.concatenate([text, left, right], axis=1)
    h = feats @ params["w1"] + params["b1"]
    h = h * 0.5 * (1.0 + lax.erf(h / math.sqrt(2.0)))
    h = _layernorm(h, params["ln2_w"], params["ln2_b"], 1e-12)
    return h @ params["w2"] + params["b2"]


def reference_forward_matched(image_features, text_features, params,
                              compute_dtype=jnp.bfloat16):
    """Reference with the same bf16-operand / f32-accumulate matmul precision."""
    B = text_features.shape[0]
    text = _layernorm(text_features, params["ln_w"], params["ln_b"], 1e-5)
    left = _layernorm(image_features[:B], params["ln_w"], params["ln_b"], 1e-5)
    right = _layernorm(image_features[B:], params["ln_w"], params["ln_b"], 1e-5)
    feats = jnp.concatenate([text, left, right], axis=1).astype(compute_dtype)
    h = jnp.dot(feats, params["w1"].astype(compute_dtype),
                preferred_element_type=jnp.float32) + params["b1"]
    h = h * 0.5 * (1.0 + lax.erf(h / math.sqrt(2.0)))
    h = _layernorm(h, params["ln2_w"], params["ln2_b"], 1e-12)
    return jnp.dot(h.astype(compute_dtype), params["w2"].astype(compute_dtype),
                   preferred_element_type=jnp.float32) + params["b2"]


if __name__ == "__main__":
    key = jax.random.PRNGKey(0)
    k_img, k_txt, k_par = jax.random.split(key, 3)

    B = 4            # number of (left, right, text) samples
    HID = 128        # hid_dim of SimpleClassifier
    OUT = 2          # out_dim (default in the module)

    # "CLIP outputs" (synthetic): images produce 2B feature rows, text B rows.
    image_features = jax.random.normal(k_img, (2 * B, EMBED), jnp.float32)
    text_features = jax.random.normal(k_txt, (B, EMBED), jnp.float32)

    params = init_params(k_par, 3 * EMBED, HID, OUT)

    out = reasoning_xmlclip_forward(image_features, text_features, params)
    out = jax.block_until_ready(out)
    assert out.shape == (B, OUT)

    # Tight check against a reference with matching matmul precision.
    ref_bf16 = reference_forward_matched(image_features, text_features, params)
    assert jnp.allclose(out, ref_bf16, atol=2e-3, rtol=2e-3), (out, ref_bf16)

    # Loose check against the full-f32 module math (bf16 operand rounding).
    ref_f32 = reference_forward(image_features, text_features, params)
    assert jnp.allclose(out, ref_f32, atol=5e-2, rtol=5e-2), (out, ref_f32)

    print("KERNEL_OK")
</pallas_src>

<mosaic_0001>
module attributes {stable_mosaic.version = 11 : i64} {
  func.func @reasoning_kernel(%arg0: i32, %arg1: memref<8x512xf32, #tpu.memory_space<vmem>>, %arg2: memref<8x512xf32, #tpu.memory_space<vmem>>, %arg3: memref<8x512xf32, #tpu.memory_space<vmem>>, %arg4: memref<1x512xf32, #tpu.memory_space<vmem>>, %arg5: memref<1x512xf32, #tpu.memory_space<vmem>>, %arg6: memref<1536x128xbf16, #tpu.memory_space<vmem>>, %arg7: memref<1x128xf32, #tpu.memory_space<vmem>>, %arg8: memref<1x128xf32, #tpu.memory_space<vmem>>, %arg9: memref<1x128xf32, #tpu.memory_space<vmem>>, %arg10: memref<128x128xbf16, #tpu.memory_space<vmem>>, %arg11: memref<1x128xf32, #tpu.memory_space<vmem>>, %arg12: memref<8x128xf32, #tpu.memory_space<vmem>>, %arg13: memref<8x1536xbf16, #tpu.memory_space<vmem>>) attributes {dimension_semantics = [#tpu.dimension_semantics<parallel>], iteration_bounds = array<i64: 1>, scalar_prefetch = 0 : i64, scratch_operands = 1 : i64, tpu.core_type = #tpu.core_type<tc>, window_params = [{transform_indices = @transform_0, window_bounds = array<i64: 8, 512>}, {transform_indices = @transform_1, window_bounds = array<i64: 8, 512>}, {transform_indices = @transform_2, window_bounds = array<i64: 8, 512>}, {pipeline_mode = #tpu.pipeline_mode<synchronous>, transform_indices = @transform_3, window_bounds = array<i64: 1, 512>}, {pipeline_mode = #tpu.pipeline_mode<synchronous>, transform_indices = @transform_4, window_bounds = array<i64: 1, 512>}, {pipeline_mode = #tpu.pipeline_mode<synchronous>, transform_indices = @transform_5, window_bounds = array<i64: 1536, 128>}, {pipeline_mode = #tpu.pipeline_mode<synchronous>, transform_indices = @transform_6, window_bounds = array<i64: 1, 128>}, {pipeline_mode = #tpu.pipeline_mode<synchronous>, transform_indices = @transform_7, window_bounds = array<i64: 1, 128>}, {pipeline_mode = #tpu.pipeline_mode<synchronous>, transform_indices = @transform_8, window_bounds = array<i64: 1, 128>}, {pipeline_mode = #tpu.pipeline_mode<synchronous>, transform_indices = @transform_9, window_bounds = array<i64: 128, 128>}, {pipeline_mode = #tpu.pipeline_mode<synchronous>, transform_indices = @transform_10, window_bounds = array<i64: 1, 128>}, {transform_indices = @transform_11, window_bounds = array<i64: 8, 128>}]} {
    %c0 = arith.constant 0 : index
    %c0_0 = arith.constant 0 : index
    %0 = vector.load %arg4[%c0, %c0_0] : memref<1x512xf32, #tpu.memory_space<vmem>>, vector<1x512xf32>
    %c0_1 = arith.constant 0 : index
    %c0_2 = arith.constant 0 : index
    %1 = vector.load %arg5[%c0_1, %c0_2] : memref<1x512xf32, #tpu.memory_space<vmem>>, vector<1x512xf32>
    %c0_3 = arith.constant 0 : index
    %c0_4 = arith.constant 0 : index
    %2 = vector.load %arg1[%c0_3, %c0_4] : memref<8x512xf32, #tpu.memory_space<vmem>>, vector<8x512xf32>
    %cst = arith.constant dense<0.000000e+00> : vector<8xf32>
    %3 = vector.multi_reduction <add>, %2, %cst [1] : vector<8x512xf32> to vector<8xf32>
    %4 = vector.shape_cast %3 : vector<8xf32> to vector<8x1xf32>
    %cst_5 = arith.constant 5.120000e+02 : f32
    %5 = vector.broadcast %cst_5 : f32 to vector<8x1xf32>
    %6 = arith.divf %4, %5 : vector<8x1xf32>
    %7 = vector.broadcast %6 : vector<8x1xf32> to vector<8x512xf32>
    %8 = arith.subf %2, %7 : vector<8x512xf32>
    %9 = arith.mulf %8, %8 : vector<8x512xf32>
    %cst_6 = arith.constant dense<0.000000e+00> : vector<8xf32>
    %10 = vector.multi_reduction <add>, %9, %cst_6 [1] : vector<8x512xf32> to vector<8xf32>
    %11 = vector.shape_cast %10 : vector<8xf32> to vector<8x1xf32>
    %cst_7 = arith.constant 5.120000e+02 : f32
    %12 = vector.broadcast %cst_7 : f32 to vector<8x1xf32>
    %13 = arith.divf %11, %12 : vector<8x1xf32>
    %cst_8 = arith.constant 9.99999974E-6 : f32
    %14 = vector.broadcast %cst_8 : f32 to vector<8x1xf32>
    %15 = arith.addf %13, %14 : vector<8x1xf32>
    %16 = math.rsqrt %15 : vector<8x1xf32>
    %17 = vector.broadcast %16 : vector<8x1xf32> to vector<8x512xf32>
    %18 = arith.mulf %8, %17 : vector<8x512xf32>
    %19 = vector.broadcast %0 : vector<1x512xf32> to vector<8x512xf32>
    %20 = arith.mulf %18, %19 : vector<8x512xf32>
    %21 = vector.broadcast %1 : vector<1x512xf32> to vector<8x512xf32>
    %22 = arith.addf %20, %21 : vector<8x512xf32>
    %23 = arith.truncf %22 : vector<8x512xf32> to vector<8x512xbf16>
    %c0_9 = arith.constant 0 : index
    %c0_10 = arith.constant 0 : index
    %24 = vector.load %arg13[%c0_9, %c0_10] : memref<8x1536xbf16, #tpu.memory_space<vmem>>, vector<8x512xbf16>
    tpu.vector_store %arg13[%c0_9, %c0_10], %23 {strides = array<i32>} : memref<8x1536xbf16, #tpu.memory_space<vmem>>, vector<8x512xbf16>,
    %c0_11 = arith.constant 0 : index
    %c0_12 = arith.constant 0 : index
    %25 = vector.load %arg2[%c0_11, %c0_12] : memref<8x512xf32, #tpu.memory_space<vmem>>, vector<8x512xf32>
    %cst_13 = arith.constant dense<0.000000e+00> : vector<8xf32>
    %26 = vector.multi_reduction <add>, %25, %cst_13 [1] : vector<8x512xf32> to vector<8xf32>
    %27 = vector.shape_cast %26 : vector<8xf32> to vector<8x1xf32>
    %cst_14 = arith.constant 5.120000e+02 : f32
    %28 = vector.broadcast %cst_14 : f32 to vector<8x1xf32>
    %29 = arith.divf %27, %28 : vector<8x1xf32>
    %30 = vector.broadcast %29 : vector<8x1xf32> to vector<8x512xf32>
    %31 = arith.subf %25, %30 : vector<8x512xf32>
    %32 = arith.mulf %31, %31 : vector<8x512xf32>
    %cst_15 = arith.constant dense<0.000000e+00> : vector<8xf32>
    %33 = vector.multi_reduction <add>, %32, %cst_15 [1] : vector<8x512xf32> to vector<8xf32>
    %34 = vector.shape_cast %33 : vector<8xf32> to vector<8x1xf32>
    %cst_16 = arith.constant 5.120000e+02 : f32
    %35 = vector.broadcast %cst_16 : f32 to vector<8x1xf32>
    %36 = arith.divf %34, %35 : vector<8x1xf32>
    %cst_17 = arith.constant 9.99999974E-6 : f32
    %37 = vector.broadcast %cst_17 : f32 to vector<8x1xf32>
    %38 = arith.addf %36, %37 : vector<8x1xf32>
    %39 = math.rsqrt %38 : vector<8x1xf32>
    %40 = vector.broadcast %39 : vector<8x1xf32> to vector<8x512xf32>
    %41 = arith.mulf %31, %40 : vector<8x512xf32>
    %42 = vector.broadcast %0 : vector<1x512xf32> to vector<8x512xf32>
    %43 = arith.mulf %41, %42 : vector<8x512xf32>
    %44 = vector.broadcast %1 : vector<1x512xf32> to vector<8x512xf32>
    %45 = arith.addf %43, %44 : vector<8x512xf32>
    %46 = arith.truncf %45 : vector<8x512xf32> to vector<8x512xbf16>
    %c0_18 = arith.constant 0 : index
    %c512 = arith.constant 512 : index
    %47 = vector.load %arg13[%c0_18, %c512] : memref<8x1536xbf16, #tpu.memory_space<vmem>>, vector<8x512xbf16>
    tpu.vector_store %arg13[%c0_18, %c512], %46 {strides = array<i32>} : memref<8x1536xbf16, #tpu.memory_space<vmem>>, vector<8x512xbf16>,
    %c0_19 = arith.constant 0 : index
    %c0_20 = arith.constant 0 : index
    %48 = vector.load %arg3[%c0_19, %c0_20] : memref<8x512xf32, #tpu.memory_space<vmem>>, vector<8x512xf32>
    %cst_21 = arith.constant dense<0.000000e+00> : vector<8xf32>
    %49 = vector.multi_reduction <add>, %48, %cst_21 [1] : vector<8x512xf32> to vector<8xf32>
    %50 = vector.shape_cast %49 : vector<8xf32> to vector<8x1xf32>
    %cst_22 = arith.constant 5.120000e+02 : f32
    %51 = vector.broadcast %cst_22 : f32 to vector<8x1xf32>
    %52 = arith.divf %50, %51 : vector<8x1xf32>
    %53 = vector.broadcast %52 : vector<8x1xf32> to vector<8x512xf32>
    %54 = arith.subf %48, %53 : vector<8x512xf32>
    %55 = arith.mulf %54, %54 : vector<8x512xf32>
    %cst_23 = arith.constant dense<0.000000e+00> : vector<8xf32>
    %56 = vector.multi_reduction <add>, %55, %cst_23 [1] : vector<8x512xf32> to vector<8xf32>
    %57 = vector.shape_cast %56 : vector<8xf32> to vector<8x1xf32>
    %cst_24 = arith.constant 5.120000e+02 : f32
    %58 = vector.broadcast %cst_24 : f32 to vector<8x1xf32>
    %59 = arith.divf %57, %58 : vector<8x1xf32>
    %cst_25 = arith.constant 9.99999974E-6 : f32
    %60 = vector.broadcast %cst_25 : f32 to vector<8x1xf32>
    %61 = arith.addf %59, %60 : vector<8x1xf32>
    %62 = math.rsqrt %61 : vector<8x1xf32>
    %63 = vector.broadcast %62 : vector<8x1xf32> to vector<8x512xf32>
    %64 = arith.mulf %54, %63 : vector<8x512xf32>
    %65 = vector.broadcast %0 : vector<1x512xf32> to vector<8x512xf32>
    %66 = arith.mulf %64, %65 : vector<8x512xf32>
    %67 = vector.broadcast %1 : vector<1x512xf32> to vector<8x512xf32>
    %68 = arith.addf %66, %67 : vector<8x512xf32>
    %69 = arith.truncf %68 : vector<8x512xf32> to vector<8x512xbf16>
    %c0_26 = arith.constant 0 : index
    %c1024 = arith.constant 1024 : index
    %70 = vector.load %arg13[%c0_26, %c1024] : memref<8x1536xbf16, #tpu.memory_space<vmem>>, vector<8x512xbf16>
    tpu.vector_store %arg13[%c0_26, %c1024], %69 {strides = array<i32>} : memref<8x1536xbf16, #tpu.memory_space<vmem>>, vector<8x512xbf16>,
    %c0_27 = arith.constant 0 : index
    %c0_28 = arith.constant 0 : index
    %71 = vector.load %arg13[%c0_27, %c0_28] : memref<8x1536xbf16, #tpu.memory_space<vmem>>, vector<8x1536xbf16>
    %c0_29 = arith.constant 0 : index
    %c0_30 = arith.constant 0 : index
    %72 = vector.load %arg6[%c0_29, %c0_30] : memref<1536x128xbf16, #tpu.memory_space<vmem>>, vector<1536x128xbf16>
    %cst_31 = arith.constant dense<0.000000e+00> : vector<8x128xf32>
    %73 = tpu.matmul %71, %72, %cst_31 {dimension_numbers = #tpu.dot_dimension_numbers<[1], [0], [0], [1], [0, 0, 1, 1], [], []>} : vector<8x1536xbf16>, vector<1536x128xbf16>, vector<8x128xf32> -> vector<8x128xf32>
    %c0_32 = arith.constant 0 : index
    %c0_33 = arith.constant 0 : index
    %74 = vector.load %arg7[%c0_32, %c0_33] : memref<1x128xf32, #tpu.memory_space<vmem>>, vector<1x128xf32>
    %75 = vector.broadcast %74 : vector<1x128xf32> to vector<8x128xf32>
    %76 = arith.addf %73, %75 : vector<8x128xf32>
    %cst_34 = arith.constant 5.000000e-01 : f32
    %77 = vector.broadcast %cst_34 : f32 to vector<8x128xf32>
    %78 = arith.mulf %76, %77 : vector<8x128xf32>
    %cst_35 = arith.constant 1.41421354 : f32
    %79 = vector.broadcast %cst_35 : f32 to vector<8x128xf32>
    %80 = arith.divf %76, %79 : vector<8x128xf32>
    %81 = math.erf %80 : vector<8x128xf32>
    %cst_36 = arith.constant 1.000000e+00 : f32
    %82 = vector.broadcast %cst_36 : f32 to vector<8x128xf32>
    %83 = arith.addf %82, %81 : vector<8x128xf32>
    %84 = arith.mulf %78, %83 : vector<8x128xf32>
    %c0_37 = arith.constant 0 : index
    %c0_38 = arith.constant 0 : index
    %85 = vector.load %arg8[%c0_37, %c0_38] : memref<1x128xf32, #tpu.memory_space<vmem>>, vector<1x128xf32>
    %c0_39 = arith.constant 0 : index
    %c0_40 = arith.constant 0 : index
    %86 = vector.load %arg9[%c0_39, %c0_40] : memref<1x128xf32, #tpu.memory_space<vmem>>, vector<1x128xf32>
    %cst_41 = arith.constant dense<0.000000e+00> : vector<8xf32>
    %87 = vector.multi_reduction <add>, %84, %cst_41 [1] : vector<8x128xf32> to vector<8xf32>
    %88 = vector.shape_cast %87 : vector<8xf32> to vector<8x1xf32>
    %cst_42 = arith.constant 1.280000e+02 : f32
    %89 = vector.broadcast %cst_42 : f32 to vector<8x1xf32>
    %90 = arith.divf %88, %89 : vector<8x1xf32>
    %91 = vector.broadcast %90 : vector<8x1xf32> to vector<8x128xf32>
    %92 = arith.subf %84, %91 : vector<8x128xf32>
    %93 = arith.mulf %92, %92 : vector<8x128xf32>
    %cst_43 = arith.constant dense<0.000000e+00> : vector<8xf32>
    %94 = vector.multi_reduction <add>, %93, %cst_43 [1] : vector<8x128xf32> to vector<8xf32>
    %95 = vector.shape_cast %94 : vector<8xf32> to vector<8x1xf32>
    %cst_44 = arith.constant 1.280000e+02 : f32
    %96 = vector.broadcast %cst_44 : f32 to vector<8x1xf32>
    %97 = arith.divf %95, %96 : vector<8x1xf32>
    %cst_45 = arith.constant 9.99999996E-13 : f32
    %98 = vector.broadcast %cst_45 : f32 to vector<8x1xf32>
    %99 = arith.addf %97, %98 : vector<8x1xf32>
    %100 = math.rsqrt %99 : vector<8x1xf32>
    %101 = vector.broadcast %100 : vector<8x1xf32> to vector<8x128xf32>
    %102 = arith.mulf %92, %101 : vector<8x128xf32>
    %103 = vector.broadcast %85 : vector<1x128xf32> to vector<8x128xf32>
    %104 = arith.mulf %102, %103 : vector<8x128xf32>
    %105 = vector.broadcast %86 : vector<1x128xf32> to vector<8x128xf32>
    %106 = arith.addf %104, %105 : vector<8x128xf32>
    %107 = arith.truncf %106 : vector<8x128xf32> to vector<8x128xbf16>
    %c0_46 = arith.constant 0 : index
    %c0_47 = arith.constant 0 : index
    %108 = vector.load %arg10[%c0_46, %c0_47] : memref<128x128xbf16, #tpu.memory_space<vmem>>, vector<128x128xbf16>
    %cst_48 = arith.constant dense<0.000000e+00> : vector<8x128xf32>
    %109 = tpu.matmul %107, %108, %cst_48 {dimension_numbers = #tpu.dot_dimension_numbers<[1], [0], [0], [1], [0, 0, 1, 1], [], []>} : vector<8x128xbf16>, vector<128x128xbf16>, vector<8x128xf32> -> vector<8x128xf32>
    %c0_49 = arith.constant 0 : index
    %c0_50 = arith.constant 0 : index
    %110 = vector.load %arg11[%c0_49, %c0_50] : memref<1x128xf32, #tpu.memory_space<vmem>>, vector<1x128xf32>
    %111 = vector.broadcast %110 : vector<1x128xf32> to vector<8x128xf32>
    %112 = arith.addf %109, %111 : vector<8x128xf32>
    %c0_51 = arith.constant 0 : index
    %c0_52 = arith.constant 0 : index
    %113 = vector.load %arg12[%c0_51, %c0_52] : memref<8x128xf32, #tpu.memory_space<vmem>>, vector<8x128xf32>
    tpu.vector_store %arg12[%c0_51, %c0_52], %112 {strides = array<i32>} : memref<8x128xf32, #tpu.memory_space<vmem>>, vector<8x128xf32>,
    return
  }
  func.func @transform_0(%arg0: i32) -> (i32, i32) {
    %c0_i32 = arith.constant 0 : i32
    %c0_i32_0 = arith.constant 0 : i32
    return %arg0, %c0_i32 : i32, i32
  }
  func.func @transform_1(%arg0: i32) -> (i32, i32) {
    %c0_i32 = arith.constant 0 : i32
    %c0_i32_0 = arith.constant 0 : i32
    return %arg0, %c0_i32 : i32, i32
  }
  func.func @transform_2(%arg0: i32) -> (i32, i32) {
    %c0_i32 = arith.constant 0 : i32
    %c0_i32_0 = arith.constant 0 : i32
    return %arg0, %c0_i32 : i32, i32
  }
  func.func @transform_3(%arg0: i32) -> (i32, i32) {
    %c0_i32 = arith.constant 0 : i32
    %c0_i32_0 = arith.constant 0 : i32
    %c0_i32_1 = arith.constant 0 : i32
    return %c0_i32, %c0_i32_0 : i32, i32
  }
  func.func @transform_4(%arg0: i32) -> (i32, i32) {
    %c0_i32 = arith.constant 0 : i32
    %c0_i32_0 = arith.constant 0 : i32
    %c0_i32_1 = arith.constant 0 : i32
    return %c0_i32, %c0_i32_0 : i32, i32
  }
  func.func @transform_5(%arg0: i32) -> (i32, i32) {
    %c0_i32 = arith.constant 0 : i32
    %c0_i32_0 = arith.constant 0 : i32
    %c0_i32_1 = arith.constant 0 : i32
    return %c0_i32, %c0_i32_0 : i32, i32
  }
  func.func @transform_6(%arg0: i32) -> (i32, i32) {
    %c0_i32 = arith.constant 0 : i32
    %c0_i32_0 = arith.constant 0 : i32
    %c0_i32_1 = arith.constant 0 : i32
    return %c0_i32, %c0_i32_0 : i32, i32
  }
  func.func @transform_7(%arg0: i32) -> (i32, i32) {
    %c0_i32 = arith.constant 0 : i32
    %c0_i32_0 = arith.constant 0 : i32
    %c0_i32_1 = arith.constant 0 : i32
    return %c0_i32, %c0_i32_0 : i32, i32
  }
  func.func @transform_8(%arg0: i32) -> (i32, i32) {
    %c0_i32 = arith.constant 0 : i32
    %c0_i32_0 = arith.constant 0 : i32
    %c0_i32_1 = arith.constant 0 : i32
    return %c0_i32, %c0_i32_0 : i32, i32
  }
  func.func @transform_9(%arg0: i32) -> (i32, i32) {
    %c0_i32 = arith.constant 0 : i32
    %c0_i32_0 = arith.constant 0 : i32
    %c0_i32_1 = arith.constant 0 : i32
    return %c0_i32, %c0_i32_0 : i32, i32
  }
  func.func @transform_10(%arg0: i32) -> (i32, i32) {
    %c0_i32 = arith.constant 0 : i32
    %c0_i32_0 = arith.constant 0 : i32
    %c0_i32_1 = arith.constant 0 : i32
    return %c0_i32, %c0_i32_0 : i32, i32
  }
  func.func @transform_11(%arg0: i32) -> (i32, i32) {
    %c0_i32 = arith.constant 0 : i32
    %c0_i32_0 = arith.constant 0 : i32
    return %arg0, %c0_i32 : i32, i32
  }
}

</mosaic_0001>

<bundles_post_ra>
// kernel: tpu_custom_call.1
= control target key start
LH: loop header
LB: loop body
LE: loop exit
PB: predicated region body
PF: predicated region fallthrough
CT: control target
= control target key end

     0   :  { %16 = vsyncpa [#allocation4], 0  ;;  %s2487_s0 = inlined_call_operand.hbm [shape: f32[8,512], index: 0, kind: input, shape index: {}]   ;;  %s2488_s1 = inlined_call_operand.hbm [shape: f32[8,512], index: 1, kind: input, shape index: {}]   ;;  %s2489_s2 = inlined_call_operand.hbm [shape: f32[8,512], index: 2, kind: input, shape index: {}]   ;;  %s2490_s3 = inlined_call_operand.hbm [shape: f32[1,512], index: 3, kind: input, shape index: {}]   ;;  %s2491_s4 = inlined_call_operand.hbm [shape: f32[1,512], index: 4, kind: input, shape index: {}]   ;;  %s2492_s5 = inlined_call_operand.hbm [shape: bf16[1536,128], index: 5, kind: input, shape index: {}]   ;;  %s2493_s6 = inlined_call_operand.vmem [shape: f32[1,128], index: 6, kind: input, shape index: {}]   ;;  %s2494_s7 = inlined_call_operand.vmem [shape: f32[1,128], index: 7, kind: input, shape index: {}]   ;;  %s2495_s8 = inlined_call_operand.vmem [shape: f32[1,128], index: 8, kind: input, shape index: {}]   ;;  %s2496_s9 = inlined_call_operand.hbm [shape: bf16[128,128], index: 9, kind: input, shape index: {}]   ;;  %s2497_s10 = inlined_call_operand.vmem [shape: f32[1,128], index: 10, kind: input, shape index: {}]   ;;  %s2498_s11 = inlined_call_operand.hbm [shape: f32[8,128], index: 11, kind: output, shape index: {}]  }
   0x1   :  { %17 = vsyncpa [#allocation7], 0 }
   0x2   :  { %18 = vsyncpa [#allocation10], 0 }
   0x3   :  { %19 = vsyncpa [#allocation13], 0  ;;  %s37_s19 = sshll.u32 %s2488_s1, 4  ;;  %s38_s19 = int_to_ptr.hbm [resolvable:$true] %s37_s19 }
   0x4   :  { %20 = vsyncpa [#allocation5], 0  ;;  %s2241_s20 = smov [#allocation6]   ;;  %s59_s24 = sshll.u32 %s2490_s3, 4  ;;  %s60_s24 = int_to_ptr.hbm [resolvable:$true] %s59_s24 }
   0x5   :  { %s39_s21 = sshll.u32 %s2241_s20, 4  ;;  %s2242_s25 = smov [#allocation9]   ;;  %s40_s21 = int_to_ptr.vmem [resolvable:$true] %s39_s21 }
   0x6   :  { %42 = dma.hbm_to_vmem [thread:$0]  %s38_s19, 512, %s40_s21, [#allocation7]  }
   0x7   :  { %s61_s26 = sshll.u32 %s2242_s25, 4  ;;  %s80_s29 = sshll.u32 %s2492_s5, 4  ;;  %s62_s26 = int_to_ptr.vmem [resolvable:$true] %s61_s26  ;;  %s81_s29 = int_to_ptr.hbm [resolvable:$true] %s80_s29 }
   0x8   :  { %64 = dma.hbm_to_vmem [thread:$0]  %s60_s24, 64, %s62_s26, [#allocation10]  }
   0x9   :  { %s2243_s1 = smov [#allocation12]   ;;  %s26_s14 = sshll.u32 %s2487_s0, 4  ;;  %s27_s14 = int_to_ptr.hbm [resolvable:$true] %s26_s14 }
   0xa   :  { %s82_s30 = sshll.u32 %s2243_s1, 4  ;;  %s2244_s15 = smov 64   ;;  %s83_s30 = int_to_ptr.vmem [resolvable:$true] %s82_s30 }
   0xb   :  { %s2245_s3 = smov 4   ;;  %s2246_s16 = smov [#allocation3]  }
   0xc   :  { %88 = dma.hbm_to_vmem [thread:$0]  %s81_s29, 12288, %s83_s30, [#allocation13], %s2244_s15, %s2244_s15, %s2245_s3  }
   0xd   :  { %s28_s17 = sshll.u32 %s2246_s16, 4  ;;  %s48_s5 = sshll.u32 %s2489_s2, 4  ;;  %s29_s17 = int_to_ptr.vmem [resolvable:$true] %s28_s17  ;;  %s49_s5 = int_to_ptr.hbm [resolvable:$true] %s48_s5 }
   0xe   :  { %31 = dma.hbm_to_vmem [thread:$0]  %s27_s14, 512, %s29_s17, [#allocation4]  }
   0xf   :  { %s70_s22 = sshll.u32 %s2491_s4, 4  ;;  %s2247_s23 = smov [#allocation8]   ;;  %s71_s22 = int_to_ptr.hbm [resolvable:$true] %s70_s22 }
  0x10   :  { %s50_s24 = sshll.u32 %s2247_s23, 4  ;;  %s2248_s0 = smov [#allocation11]   ;;  %s51_s24 = int_to_ptr.vmem [resolvable:$true] %s50_s24 }
  0x11   :  { %53 = dma.hbm_to_vmem [thread:$0]  %s49_s5, 512, %s51_s24, [#allocation7]  }
  0x12   :  { %s72_s25 = sshll.u32 %s2248_s0, 4  ;;  %s99_s28 = sshll.u32 %s2496_s9, 4  ;;  %s73_s25 = int_to_ptr.vmem [resolvable:$true] %s72_s25  ;;  %s100_s28 = int_to_ptr.hbm [resolvable:$true] %s99_s28 }
  0x13   :  { %75 = dma.hbm_to_vmem [thread:$0]  %s71_s22, 64, %s73_s25, [#allocation10]  }
  0x14   :  { %s2249_s2 = smov [#allocation14]  }
  0x15   :  { %s101_s29 = sshll.u32 %s2249_s2, 4  ;;  %s102_s29 = int_to_ptr.vmem [resolvable:$true] %s101_s29 }
  0x16   :  { %107 = dma.hbm_to_vmem [thread:$0]  %s100_s28, 1024, %s102_s29, [#allocation13], %s2244_s15, %s2244_s15, %s2245_s3  }
  0x17   :  { %2231 = dma.done.wait [#allocation4], 512  }
  0x18   :  { %2232 = vsyncadd [#allocation4], 4294966784 }
  0x19   :  { %2233 = dma.done.wait [#allocation7], 1024  }
  0x1a   :  { %2234 = vsyncadd [#allocation7], 4294966272 }
  0x1b   :  { %2235 = dma.done.wait [#allocation10], 128  }
  0x1c   :  { %2236 = vsyncadd [#allocation10], 4294967168 }
  0x1d   :  { %2237 = dma.done.wait [#allocation13], 13312  }
  0x1e   :  { %2238 = vsyncadd [#allocation13], 4294953984  ;;  %v140_v0 = vld [vmem:[#allocation3] sm:$0xff]  ;;  %v141_v1 = vld [vmem:[#allocation3 + $0x8] sm:$0xff]  ;;  %v2250_v21 = vmov 512.0   ;;  %s2253_s15 = smov [#allocation15]  }
  0x1f   :  { %v142_v2 = vld [vmem:[#allocation3 + $0x10] sm:$0xff]  ;;  %v144_v3 = vadd.f32 %v141_v1, %v140_v0  ;;  %v2335_v4 = vld [vmem:[#allocation6] sm:$0xff]  ;;  %v2337_v5 = vld [vmem:[#allocation6 + $0x8] sm:$0xff]  ;;  %2023 = vrcp.f32 %v2250_v21  ;;  %s1470_s3 = sshll.u32 %s2253_s15, 4  ;;  %s1471_s3 = int_to_ptr.vmem [resolvable:$true] %s1470_s3 }
  0x20   :  { %v143_v6 = vld [vmem:[#allocation3 + $0x18] sm:$0xff]  ;;  %v267_v7 = vld [vmem:[#allocation8] sm:$0xff]  ;;  %v2339_v9 = vld [vmem:[#allocation6 + $0x10] sm:$0xff]  ;;  %v220_v10 = vadd.f32 %v2337_v5, %v2335_v4 }
  0x21   :  { %v145_v8 = vadd.f32 %v144_v3, %v142_v2  ;;  %v268_v11 = vld [vmem:[#allocation8 + $0x8] sm:$0xff]  ;;  %v2343_v12 = vld [vmem:[#allocation8 + $0x10] sm:$0xff]  ;;  %v2345_v15 = vld [vmem:[#allocation8 + $0x18] sm:$0xff] }
  0x22   :  { %v271_v13 = vadd.f32 %v268_v11, %v267_v7  ;;  %v221_v17 = vadd.f32 %v220_v10, %v2339_v9  ;;  %v2349_v18 = vld [vmem:[#allocation6 + $0x18] sm:$0xff]  ;;  %v1909_v27 = vld [vmem:[#allocation12 + $0x38] sm:$0xff]  ;;  %v1907_v42 = vld [vmem:[#allocation12 + $0x28] sm:$0xff] }
  0x23   :  { %v146_v14 = vadd.f32 %v145_v8, %v143_v6  ;;  %v1917_v28 = vld [vmem:[#allocation12 + $0x78] sm:$0xff]  ;;  %1138 = vmatpush.bf16.msra.mxu0 %v1909_v27  ;;  %v1908_v32 = vld [vmem:[#allocation12 + $0x30] sm:$0xff]  ;;  %v1915_v44 = vld [vmem:[#allocation12 + $0x68] sm:$0xff] }
  0x24   :  { %v272_v16 = vadd.f32 %v271_v13, %v2343_v12  ;;  %v222_v20 = vadd.f32 %v221_v17, %v2349_v18  ;;  %v1925_v29 = vld [vmem:[#allocation12 + $0xb8] sm:$0xff]  ;;  %1151 = vmatpush.bf16.msra.mxu1 %v1917_v28  ;;  %v1916_v34 = vld [vmem:[#allocation12 + $0x70] sm:$0xff]  ;;  %v1923_v48 = vld [vmem:[#allocation12 + $0xa8] sm:$0xff] }
  0x25   :  { %147 = vadd.xlane.f32.xlu0 %v146_v14  ;;  %v2024_v22 = vpop.eup %2023  ;;  %v1933_v31 = vld [vmem:[#allocation12 + $0xf8] sm:$0xff]  ;;  %1164 = vmatpush.bf16.msra.mxu2 %v1925_v29  ;;  %v1924_v35 = vld [vmem:[#allocation12 + $0xb0] sm:$0xff]  ;;  %v1931_v49 = vld [vmem:[#allocation12 + $0xe8] sm:$0xff] }
  0x26   :  { %v273_v19 = vadd.f32 %v272_v16, %v2345_v15  ;;  %v150_v23 = vmul.f32 512.0, %v2024_v22  ;;  %vm154_vm0 = vweird.f32 %v2024_v22  ;;  %1177 = vmatpush.bf16.msra.mxu3 %v1933_v31  ;;  %v1932_v37 = vld [vmem:[#allocation12 + $0xf0] sm:$0xff]  ;;  %v1906_v52 = vld [vmem:[#allocation12 + $0x20] sm:$0xff]  ;;  %v1903_v27 = vld [vmem:[#allocation12 + $0x8] sm:$0xff] }
  0x27   :  { %1139 = vmatpush.bf16.msra.mxu0 %v1908_v32  ;;  %v1914_v56 = vld [vmem:[#allocation12 + $0x60] sm:$0xff]  ;;  %v1904_v16 = vld [vmem:[#allocation12 + $0x10] sm:$0xff]  ;;  %v1911_v28 = vld [vmem:[#allocation12 + $0x48] sm:$0xff] }
  0x28   :  { %274 = vadd.xlane.f32.xlu1 %v273_v19  ;;  %v151_v24 = vsub.f32 1.0, %v150_v23  ;;  %1152 = vmatpush.bf16.msra.mxu1 %v1916_v34  ;;  %v1922_v60 = vld [vmem:[#allocation12 + $0xa0] sm:$0xff]  ;;  %v1912_v17 = vld [vmem:[#allocation12 + $0x50] sm:$0xff]  ;;  %v1919_v29 = vld [vmem:[#allocation12 + $0x88] sm:$0xff] }
  0x29   :  { %1165 = vmatpush.bf16.msra.mxu2 %v1924_v35  ;;  %v1930_v61 = vld [vmem:[#allocation12 + $0xe0] sm:$0xff]  ;;  %v1928_v23 = vld [vmem:[#allocation12 + $0xd0] sm:$0xff]  ;;  %v1927_v31 = vld [vmem:[#allocation12 + $0xc8] sm:$0xff] }
  0x2a   :  { %v152_v25 = vmul.f32 %v2024_v22, %v151_v24  ;;  %1178 = vmatpush.bf16.msra.mxu3 %v1932_v37  ;;  %v1902_v32 = vld [vmem:[#allocation12] sm:$0xff]  ;;  %v1949_v37 = vld [vmem:[#allocation12 + $0x178] sm:$0xff] }
  0x2b   :  { %1140 = vmatpush.bf16.msra.mxu0 %v1907_v42  ;;  %v1918_v34 = vld [vmem:[#allocation12 + $0x80] sm:$0xff]  ;;  %v1965_v42 = vld [vmem:[#allocation12 + $0x1f8] sm:$0xff] }
  0x2c   :  { %v153_v26 = vadd.f32 %v2024_v22, %v152_v25  ;;  %1153 = vmatpush.bf16.msra.mxu1 %v1915_v44  ;;  %v1926_v35 = vld [vmem:[#allocation12 + $0xc0] sm:$0xff]  ;;  %v1948_v44 = vld [vmem:[#allocation12 + $0x170] sm:$0xff] }
  0x2d   :  { %223 = vadd.xlane.f32.xlu0 %v222_v20  ;;  %1166 = vmatpush.bf16.msra.mxu2 %v1923_v48  ;;  %v1939_v48 = vld [vmem:[#allocation12 + $0x128] sm:$0xff] }
  0x2e   :  { %v2353_v30 = vsel %vm154_vm0, %v2024_v22, %v153_v26  ;;  %1179 = vmatpush.bf16.msra.mxu3 %v1931_v49  ;;  %v1920_v22 = vld [vmem:[#allocation12 + $0x90] sm:$0xff]  ;;  %v1947_v49 = vld [vmem:[#allocation12 + $0x168] sm:$0xff] }
  0x2f   :  { %1141 = vmatpush.bf16.msra.mxu0 %v1906_v52  ;;  %v1938_v52 = vld [vmem:[#allocation12 + $0x120] sm:$0xff] }
  0x30   :  { %1154 = vmatpush.bf16.msra.mxu1 %v1914_v56  ;;  %v1954_v56 = vld [vmem:[#allocation12 + $0x1a0] sm:$0xff] }
  0x31   :  { %1167 = vmatpush.bf16.msra.mxu2 %v1922_v60  ;;  %v1953_v60 = vld [vmem:[#allocation12 + $0x198] sm:$0xff] }
  0x32   :  { %1180 = vmatpush.bf16.msra.mxu3 %v1930_v61  ;;  %v1961_v61 = vld [vmem:[#allocation12 + $0x1d8] sm:$0xff] }
  0x98   :  { %v148_v33 = vpop.xlane.xlu0 %147 }
  0x99   :  { %v156_v36 = vmul.f32 %v2353_v30, %v148_v33  ;;  %v1910_v33 = vld [vmem:[#allocation12 + $0x40] sm:$0xff] }
  0x9b   :  { %v2356_v38 = vsub.f32 %v140_v0, %v156_v36  ;;  %v2358_v39 = vsub.f32 %v141_v1, %v156_v36  ;;  %v2360_v40 = vsub.f32 %v142_v2, %v156_v36  ;;  %v275_v41 = vpop.xlane.xlu1 %274  ;;  %v2363_v45 = vsub.f32 %v143_v6, %v156_v36  ;;  %v1905_v2 = vld [vmem:[#allocation12 + $0x18] sm:$0xff] }
  0x9c   :  { %v276_v43 = vmul.f32 %v275_v41, %v2353_v30  ;;  %1142 = vmatpush.bf16.msra.mxu0 %v1905_v2  ;;  %v1941_v36 = vld [vmem:[#allocation12 + $0x138] sm:$0xff]  ;;  %v1944_v2 = vld [vmem:[#allocation12 + $0x150] sm:$0xff] }
  0x9d   :  { %v161_v46 = vmul.f32 %v2356_v38, %v2356_v38  ;;  %v162_v47 = vmul.f32 %v2358_v39, %v2358_v39  ;;  %v163_v50 = vmul.f32 %v2360_v40, %v2360_v40  ;;  %v164_v58 = vmul.f32 %v2363_v45, %v2363_v45  ;;  %v1957_v41 = vld [vmem:[#allocation12 + $0x1b8] sm:$0xff] }
  0x9e   :  { %v2371_v54 = vsub.f32 %v267_v7, %v276_v43  ;;  %v2373_v55 = vsub.f32 %v268_v11, %v276_v43  ;;  %v2391_v6 = vsub.f32 %v2343_v12, %v276_v43  ;;  %v1921_v11 = vld [vmem:[#allocation12 + $0x98] sm:$0xff]  ;;  %v2406_v19 = vsub.f32 %v2345_v15, %v276_v43  ;;  %v1940_v43 = vld [vmem:[#allocation12 + $0x130] sm:$0xff] }
  0x9f   :  { %v165_v51 = vadd.f32 %v162_v47, %v161_v46  ;;  %v1929_v12 = vld [vmem:[#allocation12 + $0xd8] sm:$0xff]  ;;  %1168 = vmatpush.bf16.msra.mxu2 %v1921_v11  ;;  %v1956_v46 = vld [vmem:[#allocation12 + $0x1b0] sm:$0xff] }
  0xa0   :  { %v224_v53 = vpop.xlane.xlu0 %223  ;;  %v281_v7 = vmul.f32 %v2371_v54, %v2371_v54  ;;  %v283_v20 = vmul.f32 %v2391_v6, %v2391_v6  ;;  %1181 = vmatpush.bf16.msra.mxu3 %v1929_v12  ;;  %1143 = vmatpush.bf16.msra.mxu0 %v1904_v16  ;;  %v284_v25 = vmul.f32 %v2406_v19, %v2406_v19  ;;  %v1964_v47 = vld [vmem:[#allocation12 + $0x1f0] sm:$0xff]  ;;  %v1950_v16 = vld [vmem:[#allocation12 + $0x180] sm:$0xff] }
  0xa1   :  { %v225_v57 = vmul.f32 %v224_v53, %v2353_v30  ;;  %v166_v59 = vadd.f32 %v165_v51, %v163_v50  ;;  %v1955_v50 = vld [vmem:[#allocation12 + $0x1a8] sm:$0xff]  ;;  %v1946_v53 = vld [vmem:[#allocation12 + $0x160] sm:$0xff] }
  0xa2   :  { %v1963_v51 = vld [vmem:[#allocation12 + $0x1e8] sm:$0xff] }
  0xa3   :  { %v167_v62 = vadd.f32 %v166_v59, %v164_v58  ;;  %v2379_v63 = vsub.f32 %v2335_v4, %v225_v57  ;;  %v2382_v0 = vsub.f32 %v2337_v5, %v225_v57  ;;  %v2385_v1 = vsub.f32 %v2339_v9, %v225_v57  ;;  %v1913_v5 = vld [vmem:[#allocation12 + $0x58] sm:$0xff]  ;;  %1169 = vmatpush.bf16.msra.mxu2 %v1920_v22 }
  0xa4   :  { %v2388_v3 = vsub.f32 %v2349_v18, %v225_v57  ;;  %v282_v4 = vmul.f32 %v2373_v55, %v2373_v55  ;;  %1155 = vmatpush.bf16.msra.mxu1 %v1913_v5  ;;  %1182 = vmatpush.bf16.msra.mxu3 %v1928_v23  ;;  %v1962_v57 = vld [vmem:[#allocation12 + $0x1e0] sm:$0xff]  ;;  %v1937_v58 = vld [vmem:[#allocation12 + $0x118] sm:$0xff]  ;;  %v1935_v5 = vld [vmem:[#allocation12 + $0x108] sm:$0xff] }
  0xa5   :  { %168 = vadd.xlane.f32.xlu1 %v167_v62  ;;  %v230_v8 = vmul.f32 %v2379_v63, %v2379_v63  ;;  %v231_v9 = vmul.f32 %v2382_v0, %v2382_v0  ;;  %v232_v10 = vmul.f32 %v2385_v1, %v2385_v1  ;;  %1144 = vmatpush.bf16.msra.mxu0 %v1903_v27  ;;  %v1945_v59 = vld [vmem:[#allocation12 + $0x158] sm:$0xff]  ;;  %v1936_v62 = vld [vmem:[#allocation12 + $0x110] sm:$0xff] }
  0xa6   :  { %v233_v13 = vmul.f32 %v2388_v3, %v2388_v3  ;;  %v285_v21 = vadd.f32 %v282_v4, %v281_v7  ;;  %v1952_v7 = vld [vmem:[#allocation12 + $0x190] sm:$0xff]  ;;  %v138_v27 = vld [vmem:[#allocation9] sm:$0xf] }
  0xa7   :  { %v234_v14 = vadd.f32 %v231_v9, %v230_v8  ;;  %1170 = vmatpush.bf16.msra.mxu2 %v1919_v29  ;;  %v1960_v4 = vld [vmem:[#allocation12 + $0x1d0] sm:$0xff]  ;;  %v1943_v8 = vld [vmem:[#allocation12 + $0x148] sm:$0xff] }
  0xa8   :  { %1156 = vmatpush.bf16.msra.mxu1 %v1912_v17  ;;  %v286_v26 = vadd.f32 %v285_v21, %v283_v20  ;;  %1183 = vmatpush.bf16.msra.mxu3 %v1927_v31  ;;  %v1951_v9 = vld [vmem:[#allocation12 + $0x188] sm:$0xff]  ;;  %v139_v31 = vld [vmem:[#allocation11] sm:$0xf] }
  0xa9   :  { %v235_v18 = vadd.f32 %v234_v14, %v232_v10  ;;  %1145 = vmatpush.bf16.msra.mxu0 %v1902_v32  ;;  %v1959_v10 = vld [vmem:[#allocation12 + $0x1c8] sm:$0xff]  ;;  %v1942_v14 = vld [vmem:[#allocation12 + $0x140] sm:$0xff] }
  0xaa   :  { %v287_v15 = vadd.f32 %v286_v26, %v284_v25 }
  0xab   :  { %v236_v24 = vadd.f32 %v235_v18, %v233_v13  ;;  %1171 = vmatpush.bf16.msra.mxu2 %v1918_v34  ;;  %v1934_v13 = vld [vmem:[#allocation12 + $0x100] sm:$0xff]  ;;  %v2417_v34 = vperm.slane %v138_v27, 0 }
  0xac   :  { %1157 = vmatpush.bf16.msra.mxu1 %v1911_v28  ;;  %1184 = vmatpush.bf16.msra.mxu3 %v1926_v35  ;;  %v1958_v18 = vld [vmem:[#allocation12 + $0x1c0] sm:$0xff]  ;;  %v2419_v35 = vperm.slane %v138_v27, 1 }
  0xad   :  { %237 = vadd.xlane.f32.xlu2 %v236_v24  ;;  %1190 = vmatpush.bf16.msrb.mxu0 %v1941_v36 }
  0xaf   :  { %1216 = vmatpush.bf16.msrb.mxu2 %v1957_v41  ;;  %v2421_v41 = vperm.slane %v138_v27, 2 }
  0xb0   :  { %1158 = vmatpush.bf16.msra.mxu1 %v1910_v33  ;;  %1229 = vmatpush.bf16.msrb.mxu3 %v1965_v42  ;;  %v2424_v42 = vperm.slane %v139_v31, 0 }
  0xb1   :  { %1191 = vmatpush.bf16.msrb.mxu0 %v1940_v43  ;;  %v2428_v43 = vperm.slane %v138_v27, 3 }
  0xb3   :  { %1217 = vmatpush.bf16.msrb.mxu2 %v1956_v46 }
  0xb4   :  { %1203 = vmatpush.bf16.msrb.mxu1 %v1949_v37  ;;  %1230 = vmatpush.bf16.msrb.mxu3 %v1964_v47  ;;  %v2430_v47 = vperm.slane %v139_v31, 2 }
  0xb5   :  { %288 = vadd.xlane.f32.xlu2 %v287_v15  ;;  %1192 = vmatpush.bf16.msrb.mxu0 %v1939_v48  ;;  %v2432_v48 = vperm.slane %v139_v31, 3 }
  0xb7   :  { %1218 = vmatpush.bf16.msrb.mxu2 %v1955_v50 }
  0xb8   :  { %1204 = vmatpush.bf16.msrb.mxu1 %v1948_v44  ;;  %1231 = vmatpush.bf16.msrb.mxu3 %v1963_v51 }
  0xb9   :  { %1193 = vmatpush.bf16.msrb.mxu0 %v1938_v52 }
  0xbb   :  { %1219 = vmatpush.bf16.msrb.mxu2 %v1954_v56 }
  0xbc   :  { %1205 = vmatpush.bf16.msrb.mxu1 %v1947_v49  ;;  %1232 = vmatpush.bf16.msrb.mxu3 %v1962_v57 }
  0xbd   :  { %1194 = vmatpush.bf16.msrb.mxu0 %v1937_v58 }
  0xbf   :  { %1220 = vmatpush.bf16.msrb.mxu2 %v1953_v60 }
  0xc0   :  { %1206 = vmatpush.bf16.msrb.mxu1 %v1946_v53  ;;  %1233 = vmatpush.bf16.msrb.mxu3 %v1961_v61 }
  0xc1   :  { %1195 = vmatpush.bf16.msrb.mxu0 %v1936_v62 }
  0xc3   :  { %1221 = vmatpush.bf16.msrb.mxu2 %v1952_v7 }
  0xc4   :  { %1207 = vmatpush.bf16.msrb.mxu1 %v1945_v59  ;;  %1234 = vmatpush.bf16.msrb.mxu3 %v1960_v4 }
  0xc5   :  { %1196 = vmatpush.bf16.msrb.mxu0 %v1935_v5 }
  0xc7   :  { %1222 = vmatpush.bf16.msrb.mxu2 %v1951_v9 }
  0xc8   :  { %1208 = vmatpush.bf16.msrb.mxu1 %v1944_v2  ;;  %1235 = vmatpush.bf16.msrb.mxu3 %v1959_v10 }
  0xc9   :  { %1197 = vmatpush.bf16.msrb.mxu0 %v1934_v13 }
  0xcb   :  { %1223 = vmatpush.bf16.msrb.mxu2 %v1950_v16 }
  0xcc   :  { %1209 = vmatpush.bf16.msrb.mxu1 %v1943_v8  ;;  %1236 = vmatpush.bf16.msrb.mxu3 %v1958_v18 }
  0xd0   :  { %1210 = vmatpush.bf16.msrb.mxu1 %v1942_v14 }
 0x118   :  { %v169_v11 = vpop.xlane.xlu1 %168 }
 0x119   :  { %v170_v12 = vmul.f32 %v169_v11, %v2353_v30 }
 0x11b   :  { %v171_v17 = vadd.f32 1e-05, %v170_v12 }
 0x11d   :  { %2025 = vrsqrt.f32 %v171_v17  ;;  %vm178_vm2 = vweird.f32 %v171_v17 }
 0x120   :  { %v238_v20 = vpop.xlane.xlu2 %237 }
 0x121   :  { %v239_v21 = vmul.f32 %v238_v20, %v2353_v30 }
 0x123   :  { %v2026_v22 = vpop.eup %2025  ;;  %v240_v23 = vadd.f32 1e-05, %v239_v21 }
 0x124   :  { %v173_v24 = vmul.f32 %v2026_v22, %v171_v17  ;;  %vm179_vm1 = vweird.f32 %v2026_v22 }
 0x125   :  { %2027 = vrsqrt.f32 %v240_v23  ;;  %vm180_vm3 = vmor %vm178_vm2, %vm179_vm1  ;;  %vm247_vm5 = vweird.f32 %v240_v23 }
 0x126   :  { %v174_v25 = vmul.f32 %v2026_v22, %v173_v24  ;;  %v1981_v24 = vld [vmem:[#allocation12 + $0x278] sm:$0xff] }
 0x128   :  { %v175_v26 = vmul.f32 0.5, %v174_v25  ;;  %v289_v15 = vpop.xlane.xlu2 %288 }
 0x129   :  { %v290_v28 = vmul.f32 %v289_v15, %v2353_v30  ;;  %v2426_v30 = vperm.slane %v139_v31, 1  ;;  %v1997_v15 = vld [vmem:[#allocation12 + $0x2f8] sm:$0xff] }
 0x12a   :  { %v176_v29 = vsub.f32 1.5, %v175_v26  ;;  %v1989_v26 = vld [vmem:[#allocation12 + $0x2b8] sm:$0xff] }
 0x12b   :  { %v2028_v32 = vpop.eup %2027  ;;  %v2415_v33 = vadd.f32 1e-05, %v290_v28 }
 0x12c   :  { %v177_v36 = vmul.f32 %v2026_v22, %v176_v29  ;;  %v242_v37 = vmul.f32 %v2028_v32, %v240_v23  ;;  %vm248_vm4 = vweird.f32 %v2028_v32  ;;  %v1973_v23 = vld [vmem:[#allocation12 + $0x238] sm:$0xff] }
 0x12d   :  { %2029 = vrsqrt.f32 %v2415_v33  ;;  %vm249_vm6 = vmor %vm247_vm5, %vm248_vm4  ;;  %vm298_vm7 = vweird.f32 %v2415_v33 }
 0x12e   :  { %v181_v44 = vsel %vm180_vm3, %v2026_v22, %v177_v36  ;;  %v243_v46 = vmul.f32 %v2028_v32, %v242_v37 }
 0x12f   :  { %v182_v49 = vmul.f32 %v181_v44, %v2356_v38  ;;  %v183_v50 = vmul.f32 %v181_v44, %v2358_v39  ;;  %v184_v51 = vmul.f32 %v181_v44, %v2360_v40  ;;  %v185_v52 = vmul.f32 %v181_v44, %v2363_v45  ;;  %v1996_v44 = vld [vmem:[#allocation12 + $0x2f0] sm:$0xff] }
 0x130   :  { %v244_v53 = vmul.f32 0.5, %v243_v46 }
 0x131   :  { %v195_v56 = vmul.f32 %v2417_v34, %v182_v49  ;;  %v196_v57 = vmul.f32 %v2419_v35, %v183_v50  ;;  %v197_v58 = vmul.f32 %v2421_v41, %v184_v51  ;;  %v198_v59 = vmul.f32 %v2428_v43, %v185_v52  ;;  %v1971_v50 = vld [vmem:[#allocation12 + $0x228] sm:$0xff] }
 0x132   :  { %v245_v60 = vsub.f32 1.5, %v244_v53  ;;  %v1979_v51 = vld [vmem:[#allocation12 + $0x268] sm:$0xff] }
 0x133   :  { %v2030_v61 = vpop.eup %2029  ;;  %v208_v38 = vadd.f32 %v2424_v42, %v195_v56  ;;  %v209_v39 = vadd.f32 %v2426_v30, %v196_v57  ;;  %v210_v40 = vadd.f32 %v2430_v47, %v197_v58  ;;  %v211_v45 = vadd.f32 %v2432_v48, %v198_v59  ;;  %v1987_v56 = vld [vmem:[#allocation12 + $0x2a8] sm:$0xff]  ;;  %v1970_v59 = vld [vmem:[#allocation12 + $0x220] sm:$0xff] }
 0x134   :  { %v246_v62 = vmul.f32 %v2028_v32, %v245_v60  ;;  %v293_v2 = vmul.f32 %v2030_v61, %v2415_v33  ;;  %vm299_vm8 = vweird.f32 %v2030_v61  ;;  %v1995_v33 = vld [vmem:[#allocation12 + $0x2e8] sm:$0xff]  ;;  %v1978_v60 = vld [vmem:[#allocation12 + $0x260] sm:$0xff] }
 0x135   :  { %v212_v7 = vpack.c.bf16 %v209_v39, %v208_v38  ;;  %v213_v4 = vpack.c.bf16 %v211_v45, %v210_v40  ;;  %vm300_vm9 = vmor %vm298_vm7, %vm299_vm8  ;;  %v1986_v45 = vld [vmem:[#allocation12 + $0x2a0] sm:$0xff] }
 0x136   :  { %v250_v5 = vsel %vm249_vm6, %v2028_v32, %v246_v62  ;;  %v294_v8 = vmul.f32 %v2030_v61, %v293_v2  ;;  %v1994_v62 = vld [vmem:[#allocation12 + $0x2e0] sm:$0xff] }
 0x137   :  { %v526_v9 = vunpack.c.l.b16 %v212_v7  ;;  %v527_v10 = vunpack.c.h.b16 %v212_v7  ;;  %v528_v11 = vunpack.c.l.b16 %v213_v4  ;;  %v529_v12 = vunpack.c.h.b16 %v213_v4 }
 0x138   :  { %v295_v13 = vmul.f32 0.5, %v294_v8  ;;  %v251_v14 = vmul.f32 %v250_v5, %v2379_v63  ;;  %v252_v16 = vmul.f32 %v250_v5, %v2382_v0  ;;  %v253_v17 = vmul.f32 %v250_v5, %v2385_v1  ;;  %v1972_v0 = vld [vmem:[#allocation12 + $0x230] sm:$0xff]  ;;  %v1969_v8 = vld [vmem:[#allocation12 + $0x218] sm:$0xff] }
 0x139   :  { %v538_v18 = vpack.c.b16 %v526_v9, %v526_v9  ;;  %v539_v20 = vpack.c.b16 %v527_v10, %v527_v10  ;;  %v540_v21 = vpack.c.b16 %v528_v11, %v528_v11  ;;  %v541_v22 = vpack.c.b16 %v529_v12, %v529_v12  ;;  %v1980_v1 = vld [vmem:[#allocation12 + $0x270] sm:$0xff]  ;;  %v1977_v9 = vld [vmem:[#allocation12 + $0x258] sm:$0xff] }
 0x13a   :  { %v296_v25 = vsub.f32 1.5, %v295_v13  ;;  %v255_v27 = vmul.f32 %v251_v14, %v2417_v34  ;;  %v256_v28 = vmul.f32 %v252_v16, %v2419_v35  ;;  %v254_v29 = vmul.f32 %v250_v5, %v2388_v3  ;;  %v1988_v3 = vld [vmem:[#allocation12 + $0x2b0] sm:$0xff]  ;;  %v1985_v12 = vld [vmem:[#allocation12 + $0x298] sm:$0xff] }
 0x13b   :  { %1146 = vmatmul.bf16.vlgmr.msra.gmra.mxu0 %v538_v18  ;;  %1159 = vmatmul.bf16.vlgmr.msra.gmra.mxu1 %v539_v20  ;;  %v257_v63 = vmul.f32 %v253_v17, %v2421_v41  ;;  %v1993_v13 = vld [vmem:[#allocation12 + $0x2d8] sm:$0xff]  ;;  %v1968_v16 = vld [vmem:[#allocation12 + $0x210] sm:$0xff] }
 0x13c   :  { %1172 = vmatmul.bf16.vlgmr.msra.gmra.mxu2 %v540_v21  ;;  %1185 = vmatmul.bf16.vlgmr.msra.gmra.mxu3 %v541_v22  ;;  %v259_v31 = vadd.f32 %v255_v27, %v2424_v42  ;;  %v260_v32 = vadd.f32 %v256_v28, %v2426_v30  ;;  %v258_v36 = vmul.f32 %v254_v29, %v2428_v43  ;;  %v1984_v17 = vld [vmem:[#allocation12 + $0x290] sm:$0xff]  ;;  %v1975_v22 = vld [vmem:[#allocation12 + $0x248] sm:$0xff] }
 0x13d   :  { %1242 = vmatpush.bf16.msra.mxu0 %v1973_v23  ;;  %1255 = vmatpush.bf16.msra.mxu1 %v1981_v24  ;;  %v297_v37 = vmul.f32 %v2030_v61, %v296_v25  ;;  %v261_v46 = vadd.f32 %v257_v63, %v2430_v47  ;;  %v1992_v18 = vld [vmem:[#allocation12 + $0x2d0] sm:$0xff]  ;;  %v1983_v23 = vld [vmem:[#allocation12 + $0x288] sm:$0xff] }
 0x13e   :  { %1268 = vmatpush.bf16.msra.mxu2 %v1989_v26  ;;  %1281 = vmatpush.bf16.msra.mxu3 %v1997_v15  ;;  %v262_v49 = vadd.f32 %v258_v36, %v2432_v48  ;;  %v263_v52 = vpack.c.bf16 %v260_v32, %v259_v31  ;;  %v1991_v24 = vld [vmem:[#allocation12 + $0x2c8] sm:$0xff]  ;;  %v1966_v15 = vld [vmem:[#allocation12 + $0x200] sm:$0xff] }
 0x13f   :  { %v301_v53 = vsel %vm300_vm9, %v2030_v61, %v297_v37  ;;  %v2019_v37 = vld [vmem:[%s2493_s6] ss:$0 sm:$0xff] }
 0x140   :  { %v264_v57 = vpack.c.bf16 %v262_v49, %v261_v46  ;;  %v302_v58 = vmul.f32 %v301_v53, %v2371_v54  ;;  %v530_v38 = vunpack.c.l.b16 %v263_v52  ;;  %v531_v39 = vunpack.c.h.b16 %v263_v52 }
 0x141   :  { %1243 = vmatpush.bf16.msra.mxu0 %v1972_v0  ;;  %1256 = vmatpush.bf16.msra.mxu1 %v1980_v1  ;;  %v303_v40 = vmul.f32 %v301_v53, %v2373_v55  ;;  %v304_v7 = vmul.f32 %v301_v53, %v2391_v6  ;;  %v305_v4 = vmul.f32 %v301_v53, %v2406_v19 }
 0x142   :  { %1269 = vmatpush.bf16.msra.mxu2 %v1988_v3  ;;  %1282 = vmatpush.bf16.msra.mxu3 %v1996_v44  ;;  %v532_v61 = vunpack.c.l.b16 %v264_v57  ;;  %v533_v2 = vunpack.c.h.b16 %v264_v57  ;;  %v542_v54 = vpack.c.b16 %v530_v38, %v530_v38  ;;  %v543_v5 = vpack.c.b16 %v531_v39, %v531_v39 }
 0x143   :  { %v306_v10 = vmul.f32 %v302_v58, %v2417_v34  ;;  %v307_v14 = vmul.f32 %v303_v40, %v2419_v35  ;;  %v308_v6 = vmul.f32 %v304_v7, %v2421_v41  ;;  %v309_v19 = vmul.f32 %v305_v4, %v2428_v43  ;;  %v1976_v34 = vld [vmem:[#allocation12 + $0x250] sm:$0xff]  ;;  %v1967_v43 = vld [vmem:[#allocation12 + $0x208] sm:$0xff] }
 0x144   :  { %v544_v55 = vpack.c.b16 %v532_v61, %v532_v61  ;;  %v545_v11 = vpack.c.b16 %v533_v2, %v533_v2  ;;  %v2251_v58 = vmov 1.4142135  }
 0x145   :  { %1244 = vmatpush.bf16.msra.mxu0 %v1971_v50  ;;  %1257 = vmatpush.bf16.msra.mxu1 %v1979_v51  ;;  %v310_v20 = vadd.f32 %v306_v10, %v2424_v42  ;;  %v311_v35 = vadd.f32 %v307_v14, %v2426_v30  ;;  %v312_v21 = vadd.f32 %v308_v6, %v2430_v47  ;;  %v1974_v42 = vld [vmem:[#allocation12 + $0x240] sm:$0xff]  ;;  %2031 = vrcp.f32 %v2251_v58 }
 0x146   :  { %1270 = vmatpush.bf16.msra.mxu2 %v1987_v56  ;;  %1283 = vmatpush.bf16.msra.mxu3 %v1995_v33  ;;  %v313_v41 = vadd.f32 %v309_v19, %v2432_v48  ;;  %v1982_v30 = vld [vmem:[#allocation12 + $0x280] sm:$0xff] }
 0x147   :  { %v314_v25 = vpack.c.bf16 %v311_v35, %v310_v20  ;;  %v1990_v47 = vld [vmem:[#allocation12 + $0x2c0] sm:$0xff] }
 0x148   :  { %v315_v26 = vpack.c.bf16 %v313_v41, %v312_v21 }
 0x149   :  { %1245 = vmatpush.bf16.msra.mxu0 %v1970_v59  ;;  %1258 = vmatpush.bf16.msra.mxu1 %v1978_v60  ;;  %v534_v27 = vunpack.c.l.b16 %v314_v25  ;;  %v535_v48 = vunpack.c.h.b16 %v314_v25 }
 0x14a   :  { %1271 = vmatpush.bf16.msra.mxu2 %v1986_v45  ;;  %1284 = vmatpush.bf16.msra.mxu3 %v1994_v62  ;;  %v536_v28 = vunpack.c.l.b16 %v315_v26  ;;  %v537_v29 = vunpack.c.h.b16 %v315_v26 }
 0x14b   :  { %1198 = vmatmul.bf16.vlgmr.msrb.gmra.mxu0 %v542_v54  ;;  %1211 = vmatmul.bf16.vlgmr.msrb.gmra.mxu1 %v543_v5  ;;  %v546_v63 = vpack.c.b16 %v534_v27, %v534_v27  ;;  %v547_v0 = vpack.c.b16 %v535_v48, %v535_v48  ;;  %v2032_v60 = vpop.eup %2031 }
 0x14c   :  { %1224 = vmatmul.bf16.vlgmr.msrb.gmra.mxu2 %v544_v55  ;;  %1237 = vmatmul.bf16.vlgmr.msrb.gmra.mxu3 %v545_v11  ;;  %v548_v1 = vpack.c.b16 %v536_v28, %v536_v28  ;;  %v549_v31 = vpack.c.b16 %v537_v29, %v537_v29  ;;  %v1296_v61 = vmul.f32 1.4142135, %v2032_v60  ;;  %vm1300_vm10 = vweird.f32 %v2032_v60 }
 0x14d   :  { %1246 = vmatpush.bf16.msra.mxu0 %v1969_v8  ;;  %1259 = vmatpush.bf16.msra.mxu1 %v1977_v9 }
 0x14e   :  { %1272 = vmatpush.bf16.msra.mxu2 %v1985_v12  ;;  %1285 = vmatpush.bf16.msra.mxu3 %v1993_v13  ;;  %v1297_v4 = vsub.f32 1.0, %v1296_v61 }
 0x150   :  { %v1298_v55 = vmul.f32 %v2032_v60, %v1297_v4 }
 0x151   :  { %1247 = vmatpush.bf16.msra.mxu0 %v1968_v16  ;;  %1260 = vmatpush.bf16.msra.mxu1 %v1976_v34 }
 0x152   :  { %1273 = vmatpush.bf16.msra.mxu2 %v1984_v17  ;;  %1286 = vmatpush.bf16.msra.mxu3 %v1992_v18  ;;  %v1299_v12 = vadd.f32 %v2032_v60, %v1298_v55  ;;  %v2004_v55 = vld [vmem:[#allocation14 + $0x30] sm:$0xff] }
 0x154   :  { %v1301_v17 = vsel %vm1300_vm10, %v2032_v60, %v1299_v12  ;;  %v2002_v12 = vld [vmem:[#allocation14 + $0x20] sm:$0xff] }
 0x155   :  { %1248 = vmatpush.bf16.msra.mxu0 %v1967_v43  ;;  %1261 = vmatpush.bf16.msra.mxu1 %v1975_v22 }
 0x156   :  { %1274 = vmatpush.bf16.msra.mxu2 %v1983_v23  ;;  %1287 = vmatpush.bf16.msra.mxu3 %v1991_v24 }
 0x159   :  { %1249 = vmatpush.bf16.msra.mxu0 %v1966_v15  ;;  %1262 = vmatpush.bf16.msra.mxu1 %v1974_v42 }
 0x15a   :  { %1275 = vmatpush.bf16.msra.mxu2 %v1982_v30  ;;  %1288 = vmatpush.bf16.msra.mxu3 %v1990_v47 }
 0x15c   :  { %1250 = vmatmul.bf16.vlgmr.msra.gmra.mxu0 %v546_v63  ;;  %1263 = vmatmul.bf16.vlgmr.msra.gmra.mxu1 %v547_v0 }
 0x15d   :  { %1276 = vmatmul.bf16.vlgmr.msra.gmra.mxu2 %v548_v1  ;;  %1289 = vmatmul.bf16.vlgmr.msra.gmra.mxu3 %v549_v31 }
 0x1b8   :  { %v1147_v32 = vpop.f32.mrf.mxu0  ;;  %v1160_v36 = vpop.f32.mrf.mxu1 }
 0x1b9   :  { %v1148_v50 = vadd.f32 %v2019_v37, %v1147_v32 }
 0x1bb   :  { %v1161_v51 = vadd.f32 %v1160_v36, %v1148_v50 }
 0x1bf   :  { %v1173_v3 = vpop.f32.mrf.mxu2  ;;  %v1186_v44 = vpop.f32.mrf.mxu3 }
 0x1c0   :  { %v1149_v46 = vpop.f32.mrf.mxu0  ;;  %v1162_v49 = vpop.f32.mrf.mxu1  ;;  %v1174_v57 = vadd.f32 %v1173_v3, %v1161_v51 }
 0x1c2   :  { %v1187_v59 = vadd.f32 %v1186_v44, %v1174_v57 }
 0x1c7   :  { %v1175_v52 = vpop.f32.mrf.mxu2  ;;  %v1188_v53 = vpop.f32.mrf.mxu3 }
 0x1c8   :  { %v1199_v56 = vpop.f32.mrf.mxu0  ;;  %v1212_v33 = vpop.f32.mrf.mxu1 }
 0x1c9   :  { %v1200_v38 = vadd.f32 %v1199_v56, %v1187_v59 }
 0x1cb   :  { %v1213_v2 = vadd.f32 %v1212_v33, %v1200_v38 }
 0x1cf   :  { %v1225_v39 = vpop.f32.mrf.mxu2  ;;  %v1238_v40 = vpop.f32.mrf.mxu3 }
 0x1d0   :  { %v1201_v45 = vpop.f32.mrf.mxu0  ;;  %v1214_v62 = vpop.f32.mrf.mxu1  ;;  %v1226_v7 = vadd.f32 %v1225_v39, %v1213_v2 }
 0x1d1   :  { %v2005_v45 = vld [vmem:[#allocation14 + $0x38] sm:$0xff] }
 0x1d2   :  { %v1239_v8 = vadd.f32 %v1238_v40, %v1226_v7  ;;  %v2252_v40 = vmov 128.0   ;;  %1451 = vmatpush.bf16.msrb.mxu0 %v2005_v45 }
 0x1d6   :  { %1452 = vmatpush.bf16.msrb.mxu0 %v2004_v55 }
 0x1d7   :  { %v1227_v54 = vpop.f32.mrf.mxu2  ;;  %v1240_v5 = vpop.f32.mrf.mxu3 }
 0x1d9   :  { %v1251_v9 = vpop.f32.mrf.mxu0  ;;  %v1264_v10 = vpop.f32.mrf.mxu1 }
 0x1da   :  { %v1252_v11 = vadd.f32 %v1251_v9, %v1239_v8 }
 0x1dc   :  { %v1265_v13 = vadd.f32 %v1264_v10, %v1252_v11  ;;  %v2003_v11 = vld [vmem:[#allocation14 + $0x28] sm:$0xff] }
 0x1dd   :  { %1453 = vmatpush.bf16.msrb.mxu0 %v2003_v11 }
 0x1e0   :  { %v1277_v14 = vpop.f32.mrf.mxu2  ;;  %v1290_v6 = vpop.f32.mrf.mxu3 }
 0x1e1   :  { %v1278_v19 = vadd.f32 %v1277_v14, %v1265_v13  ;;  %v1253_v16 = vpop.f32.mrf.mxu0  ;;  %v1266_v34 = vpop.f32.mrf.mxu1  ;;  %1454 = vmatpush.bf16.msrb.mxu0 %v2002_v12  ;;  %v2001_v13 = vld [vmem:[#allocation14 + $0x18] sm:$0xff]  ;;  %v2000_v14 = vld [vmem:[#allocation14 + $0x10] sm:$0xff] }
 0x1e3   :  { %v1291_v18 = vadd.f32 %v1290_v6, %v1278_v19  ;;  %v1999_v6 = vld [vmem:[#allocation14 + $0x8] sm:$0xff]  ;;  %v1998_v19 = vld [vmem:[#allocation14] sm:$0xff] }
 0x1e5   :  { %v1302_v20 = vmul.f32 %v1301_v17, %v1291_v18  ;;  %v1294_v60 = vmul.f32 0.5, %v1291_v18  ;;  %1455 = vmatpush.bf16.msrb.mxu0 %v2001_v13 }
 0x1e7   :  { %v1303_v35 = vmul.f32 %v1302_v20, %v1302_v20 }
 0x1e8   :  { %v1279_v21 = vpop.f32.mrf.mxu2  ;;  %v1292_v41 = vpop.f32.mrf.mxu3 }
 0x1e9   :  { %v1304_v43 = vmin.f32 %v1303_v35, 16.0  ;;  %1456 = vmatpush.bf16.msrb.mxu0 %v2000_v14 }
 0x1eb   :  { %v1305_v22 = vmul.f32 2.1237322e-06, %v1304_v43  ;;  %v1316_v23 = vmul.f32 3.8918573e-05, %v1304_v43 }
 0x1ed   :  { %v1306_v24 = vadd.f32 0.00028619796, %v1305_v22  ;;  %v1317_v25 = vadd.f32 0.001143296, %v1316_v23  ;;  %1457 = vmatpush.bf16.msrb.mxu0 %v1999_v6  ;;  %v2020_v22 = vld [vmem:[%s2494_s7] ss:$0 sm:$0xff] }
 0x1ee   :  { %s1472_s7 = sshll.u32 %s2498_s11, 4  ;;  %s1473_s7 = int_to_ptr.hbm [resolvable:$true] %s1472_s7 }
 0x1ef   :  { %v1307_v26 = vmul.f32 %v1306_v24, %v1304_v43  ;;  %v1318_v15 = vmul.f32 %v1317_v25, %v1304_v43  ;;  %v2021_v25 = vld [vmem:[%s2495_s8] ss:$0 sm:$0xff] }
 0x1f1   :  { %v1319_v42 = vadd.f32 0.014752088, %v1318_v15  ;;  %v1308_v30 = vadd.f32 0.0036580483, %v1307_v26  ;;  %1458 = vmatpush.bf16.msrb.mxu0 %v1998_v19 }
 0x1f3   :  { %v1320_v47 = vmul.f32 %v1319_v42, %v1304_v43  ;;  %v1309_v48 = vmul.f32 %v1308_v30, %v1304_v43  ;;  %v2022_v30 = vld [vmem:[%s2497_s10] ss:$0 sm:$0xff] }
 0x1f5   :  { %v1321_v27 = vadd.f32 0.112945676, %v1320_v47  ;;  %v1310_v63 = vadd.f32 0.05243302, %v1309_v48 }
 0x1f7   :  { %v1322_v28 = vmul.f32 %v1321_v27, %v1304_v43  ;;  %v1311_v31 = vmul.f32 %v1310_v63, %v1304_v43 }
 0x1f9   :  { %v1323_v29 = vadd.f32 0.4994258, %v1322_v28  ;;  %v1312_v32 = vadd.f32 0.18741608, %v1311_v31 }
 0x1fb   :  { %v1324_v0 = vmul.f32 %v1323_v29, %v1304_v43  ;;  %v1313_v37 = vmul.f32 %v1312_v32, %v1304_v43 }
 0x1fd   :  { %v1325_v1 = vadd.f32 1.0, %v1324_v0  ;;  %v1314_v49 = vadd.f32 1.1283791, %v1313_v37 }
 0x1ff   :  { %2033 = vrcp.f32 %v1325_v1  ;;  %v1337_v46 = vand.u32 2147483648, %v1325_v1  ;;  %v1335_v51 = vand.u32 2147483647, %v1325_v1  ;;  %vm1331_vm12 = vweird.f32 %v1325_v1 }
 0x200   :  { %v1315_v56 = vmul.f32 %v1314_v49, %v1302_v20  ;;  %2035 = vrcp.f32 %v2252_v40 }
 0x201   :  { %v1338_v53 = vor.u32 1.1754944e-38, %v1337_v46  ;;  %vm1336_vm14 = vcmp.eq.f32.partialorder %v1335_v51, 8.507059e+37 }
 0x205   :  { %v2034_v36 = vpop.eup %2033 }
 0x206   :  { %v1327_v3 = vmul.f32 %v2034_v36, %v1325_v1  ;;  %vm1332_vm11 = vweird.f32 %v2034_v36  ;;  %v2036_v62 = vpop.eup %2035 }
 0x207   :  { %vm1333_vm13 = vmor %vm1331_vm12, %vm1332_vm11  ;;  %v1350_v61 = vmul.f32 128.0, %v2036_v62  ;;  %vm1354_vm15 = vweird.f32 %v2036_v62 }
 0x208   :  { %v1328_v44 = vsub.f32 1.0, %v1327_v3 }
 0x209   :  { %v1351_v2 = vsub.f32 1.0, %v1350_v61 }
 0x20a   :  { %v1329_v50 = vmul.f32 %v2034_v36, %v1328_v44 }
 0x20b   :  { %v1352_v7 = vmul.f32 %v2036_v62, %v1351_v2 }
 0x20c   :  { %v1330_v52 = vadd.f32 %v2034_v36, %v1329_v50 }
 0x20d   :  { %v1353_v4 = vadd.f32 %v2036_v62, %v1352_v7 }
 0x20e   :  { %v1334_v33 = vsel %vm1333_vm13, %v2034_v36, %v1330_v52 }
 0x20f   :  { %v1339_v57 = vsel %vm1336_vm14, %v1338_v53, %v1334_v33  ;;  %v1355_v54 = vsel %vm1354_vm15, %v2036_v62, %v1353_v4 }
 0x210   :  { %v1340_v58 = vmul.f32 %v1339_v57, %v1315_v56 }
 0x212   :  { %v1869_v59 = vclamps-f32 %v1340_v58, 1.0 }
 0x214   :  { %v1343_v38 = vadd.f32 1.0, %v1869_v59 }
 0x216   :  { %v1344_v39 = vmul.f32 %v1343_v38, %v1294_v60 }
 0x218   :  { %1347 = vadd.xlane.f32.xlu0 %v1344_v39 }
 0x28b   :  { %v1348_v5 = vpop.xlane.xlu0 %1347 }
 0x28c   :  { %v1356_v8 = vmul.f32 %v1355_v54, %v1348_v5 }
 0x28e   :  { %v1357_v9 = vsub.f32 %v1344_v39, %v1356_v8 }
 0x290   :  { %v1358_v10 = vmul.f32 %v1357_v9, %v1357_v9 }
 0x292   :  { %1359 = vadd.xlane.f32.xlu1 %v1358_v10 }
 0x305   :  { %v1360_v16 = vpop.xlane.xlu1 %1359 }
 0x306   :  { %v1361_v34 = vmul.f32 %v1360_v16, %v1355_v54 }
 0x308   :  { %v1362_v17 = vadd.f32 1e-12, %v1361_v34 }
 0x30a   :  { %2037 = vrsqrt.f32 %v1362_v17  ;;  %vm1369_vm1 = vweird.f32 %v1362_v17 }
 0x310   :  { %v2038_v18 = vpop.eup %2037 }
 0x311   :  { %v1364_v20 = vmul.f32 %v2038_v18, %v1362_v17  ;;  %vm1370_vm0 = vweird.f32 %v2038_v18 }
 0x312   :  { %vm1371_vm2 = vmor %vm1369_vm1, %vm1370_vm0 }
 0x313   :  { %v1365_v35 = vmul.f32 %v2038_v18, %v1364_v20 }
 0x315   :  { %v1366_v21 = vmul.f32 0.5, %v1365_v35 }
 0x317   :  { %v1367_v41 = vsub.f32 1.5, %v1366_v21 }
 0x319   :  { %v1368_v43 = vmul.f32 %v2038_v18, %v1367_v41 }
 0x31b   :  { %v1372_v23 = vsel %vm1371_vm2, %v2038_v18, %v1368_v43 }
 0x31c   :  { %v1373_v24 = vmul.f32 %v1372_v23, %v1357_v9 }
 0x31e   :  { %v1377_v26 = vmul.f32 %v2020_v22, %v1373_v24 }
 0x320   :  { %v1381_v15 = vadd.f32 %v2021_v25, %v1377_v26 }
 0x322   :  { %v1382_v42 = vpack.c.bf16 %v1381_v15, %v1381_v15 }
 0x324   :  { %1459 = vmatmul.bf16.vlgmr.msrb.gmra.mxu0 %v1382_v42 }
 0x3a1   :  { %v1460_v47 = vpop.f32.mrf.mxu0 }
 0x3a2   :  { %v1461_v27 = vadd.f32 %v2022_v30, %v1460_v47 }
 0x3a4   :  { %1464 = vst [vmem:[#allocation15] sm:$0xff] %v1461_v27 }
 0x3a5   :  { %1475 = dma.vmem_to_hbm [thread:$0]  %s1471_s3, 128, %s1473_s7, [#allocation5]  }
 0x3a9   :  { %v1462_v48 = vpop.f32.mrf.mxu0 }
 0x3aa   :  { %2239 = dma.done.wait [#allocation5], 128  }
 0x3ab   :  { %2240 = vsyncadd [#allocation5], 4294967168 }
 0x3ac   :  { %1480 = vsyncpa [#allocation4], 1 }
 0x3ad   :  { %1481 = vsyncpa [#allocation7], 1 }
 0x3ae   :  { %1482 = vsyncpa [#allocation10], 1 }
 0x3af   :  { %1483 = vsyncpa [#allocation13], 1 }
 0x3b0   :  { %1484 = vsyncpa [#allocation5], 1 }

</bundles_post_ra>
